<compile_context>
chip_gen: v7x
topology: tpu7x:2x2x1
jax: 0.10.0
libtpu: 0.0.40
codegen_flags: <defaults>
</compile_context>

<pallas_src>
from functools import partial

import jax
import jax.numpy as jnp
from jax.experimental import pallas as pl
from jax.experimental.pallas import tpu as pltpu


def _fused_blocks_kernel(x_ref, w1_ref, b1_ref, w2_ref, b2_ref, o_ref, *, unroll):
    # x_ref/o_ref: (1, C, TG)  -- channels on sublanes, points on the 128 lanes
    # w1_ref: (NB, Cmid, C) bf16; b1_ref: (NB, Cmid, 1) f32
    # w2_ref: (NB, C, Cmid) bf16; b2_ref: (NB, C, 1)    f32
    x = x_ref[0].astype(jnp.float32)                      # residual carry in f32
    nb = w1_ref.shape[0]

    def one_block(k, x):
        # net1: Conv1d(k=1)+folded BN (+bias) + ReLU.  bf16 MXU operands,
        # f32 accumulation.
        h = jnp.dot(w1_ref[k], x.astype(w1_ref.dtype),
                    preferred_element_type=jnp.float32) + b1_ref[k]
        h = jnp.maximum(h, 0.0)                            # (Cmid, TG)
        # net2: Conv1d(k=1)+folded BN (+bias)
        y = jnp.dot(w2_ref[k], h.astype(w2_ref.dtype),
                    preferred_element_type=jnp.float32) + b2_ref[k]
        # residual + final activation
        return jnp.maximum(y + x, 0.0)                     # (C, TG)

    if unroll:
        for k in range(nb):                                # small NB: unrolled
            x = one_block(k, x)
    else:
        x = jax.lax.fori_loop(0, nb, one_block, x)         # bounds live ranges
    o_ref[0] = x.astype(o_ref.dtype)


def _vmem_plan(B, C, cmid, nb, G, x_itemsize, w_itemsize, requested_tg):
    """Pick the point-axis tile and vmem_limit_bytes for the current chip."""
    devs = jax.devices()
    kind = str(getattr(devs[0], "device_kind", "")).lower() if devs else ""
    is_v7 = "v7" in kind
    budget = (44 << 20) if is_v7 else (96 << 20)   # headroom under 64 / 128 MiB

    pad2d = lambda r, c: (-(-r // 8) * 8) * (-(-c // 128) * 128)
    # Weights/biases are fetched once but double-buffered by the pipeline.
    w_bytes = 2 * nb * (pad2d(cmid, C) + pad2d(C, cmid)) * w_itemsize
    b_bytes = 2 * nb * (pad2d(cmid, 1) + pad2d(C, 1)) * 4

    if requested_tg >= G or G <= 128:
        tg = G                                      # full extent (always legal)
    else:
        tg = max(128, (min(requested_tg, G) // 128) * 128)   # lane-dense tile

    def need(t):
        io = 2 * 2 * C * t * x_itemsize             # x + out tiles, double buffered
        live = (2 * C + cmid) * t * 4               # f32 carry / h / y (rough)
        return w_bytes + b_bytes + io + live

    while tg > 128 and need(tg) > budget:
        tg = max(128, ((tg // 2) // 128) * 128)

    # Only v7x has 2 TensorCores per chip: ensure >=2 grid steps when B == 1.
    if is_v7 and B == 1 and G >= 256 and pl.cdiv(G, tg) < 2:
        tg = max(128, pl.cdiv(pl.cdiv(G, 2), 128) * 128)

    vmem_limit = int(min(budget, max(32 << 20, need(tg) * 5 // 4)))
    return tg, vmem_limit


@partial(jax.jit, static_argnames=("tile_g", "compute_dtype"), donate_argnums=(0,))
def pos_extraction(x_bcg, w1s, b1s, w2s, b2s, *, tile_g=2048,
                   compute_dtype=jnp.bfloat16):
    """PosExtraction forward.  x_bcg: [B, C, G] (PyTorch layout) -> [B, C, G].

    w1s: [NB, Cmid, C], b1s: [NB, Cmid, 1], w2s: [NB, C, Cmid], b2s: [NB, C, 1]
    (BatchNorm already folded into the conv weights / biases).
    x_bcg is donated (aliased with the output); pass bf16 x to halve activation
    HBM traffic; `compute_dtype` controls the MXU operand dtype.
    """
    B, C, G = x_bcg.shape
    nb, cmid, _ = w1s.shape

    w1c = w1s.astype(compute_dtype)
    w2c = w2s.astype(compute_dtype)
    b1c = b1s.astype(jnp.float32)
    b2c = b2s.astype(jnp.float32)

    tg, vmem_limit = _vmem_plan(B, C, cmid, nb, G,
                                jnp.dtype(x_bcg.dtype).itemsize,
                                jnp.dtype(compute_dtype).itemsize, tile_g)
    grid = (B, pl.cdiv(G, tg))

    # Small NB / small C: fully unroll (best LLO schedule).  Large C or many
    # blocks: fori_loop so x/h/y live ranges don't all spill to VMEM.
    unroll = (nb <= 2) and (C < 256)
    kernel = partial(_fused_blocks_kernel, unroll=unroll)

    return pl.pallas_call(
        kernel,
        out_shape=jax.ShapeDtypeStruct((B, C, G), x_bcg.dtype),
        grid=grid,
        in_specs=[
            pl.BlockSpec((1, C, tg), lambda b, g: (b, 0, g)),
            # Constant index_map -> weights/biases fetched once, stay resident.
            pl.BlockSpec((nb, cmid, C), lambda b, g: (0, 0, 0)),
            pl.BlockSpec((nb, cmid, 1), lambda b, g: (0, 0, 0)),
            pl.BlockSpec((nb, C, cmid), lambda b, g: (0, 0, 0)),
            pl.BlockSpec((nb, C, 1), lambda b, g: (0, 0, 0)),
        ],
        out_specs=pl.BlockSpec((1, C, tg), lambda b, g: (b, 0, g)),
        input_output_aliases={0: 0},
        compiler_params=pltpu.CompilerParams(
            dimension_semantics=("parallel", "parallel"),
            vmem_limit_bytes=vmem_limit),
    )(x_bcg, w1c, b1c, w2c, b2c)


def init_block_params(key, channels, res_expansion=1.0):
    """Deterministic synthetic params for one ConvBNReLURes1D block, with
    BatchNorm (eval mode) folded into the conv weights/biases.
    Returns w1 (Cmid, C), b1 (Cmid, 1), w2 (C, Cmid), b2 (C, 1) so the kernel
    computes  w @ x  with x channel-first."""
    cmid = int(channels * res_expansion)
    k1, k2, k3, k4, k5, k6 = jax.random.split(key, 6)
    w1 = jax.random.normal(k1, (cmid, channels), jnp.float32) / jnp.sqrt(channels)
    b1 = 0.01 * jax.random.normal(k2, (cmid,), jnp.float32)
    w2 = jax.random.normal(k3, (channels, cmid), jnp.float32) / jnp.sqrt(cmid)
    b2 = 0.01 * jax.random.normal(k4, (channels,), jnp.float32)
    gamma1 = 1.0 + 0.1 * jax.random.normal(k5, (cmid,), jnp.float32)
    beta1 = 0.05 * jnp.ones((cmid,), jnp.float32)
    mean1 = jnp.zeros((cmid,), jnp.float32)
    var1 = jnp.ones((cmid,), jnp.float32)
    gamma2 = 1.0 + 0.1 * jax.random.normal(k6, (channels,), jnp.float32)
    beta2 = -0.05 * jnp.ones((channels,), jnp.float32)
    mean2 = jnp.zeros((channels,), jnp.float32)
    var2 = jnp.ones((channels,), jnp.float32)
    eps = 1e-5
    s1 = gamma1 / jnp.sqrt(var1 + eps)
    s2 = gamma2 / jnp.sqrt(var2 + eps)
    w1f = w1 * s1[:, None]                       # (Cmid, C)
    b1f = ((b1 - mean1) * s1 + beta1)[:, None]   # (Cmid, 1)
    w2f = w2 * s2[:, None]                       # (C, Cmid)
    b2f = ((b2 - mean2) * s2 + beta2)[:, None]   # (C, 1)
    return w1f, b1f, w2f, b2f


def init_params(key, blocks, channels, res_expansion=1.0):
    per = [init_block_params(k, channels, res_expansion)
           for k in jax.random.split(key, blocks)]
    return (jnp.stack([p[0] for p in per]), jnp.stack([p[1] for p in per]),
            jnp.stack([p[2] for p in per]), jnp.stack([p[3] for p in per]))


def pos_extraction_ref(x_bcg, w1s, b1s, w2s, b2s):
    """Plain-JAX f32 reference (module semantics, channel-first)."""
    x = x_bcg.astype(jnp.float32)
    for k in range(w1s.shape[0]):
        h = jnp.maximum(jnp.einsum('oc,bcg->bog', w1s[k], x) + b1s[k][None], 0.0)
        y = jnp.einsum('co,bog->bcg', w2s[k], h) + b2s[k][None]
        x = jnp.maximum(y + x, 0.0)
    return x


if __name__ == "__main__":
    B, C, G = 2, 32, 256   # input[b, d, g]
    blocks = 2

    key = jax.random.PRNGKey(0)
    kx, kp, kx2 = jax.random.split(key, 3)
    w1s, b1s, w2s, b2s = init_params(kp, blocks, C, res_expansion=1.0)

    # --- f32 activation I/O (PyTorch-parity layout/dtype) ---
    x = jax.random.normal(kx, (B, C, G), jnp.float32)
    ref = jax.block_until_ready(pos_extraction_ref(x, w1s, b1s, w2s, b2s))
    out = jax.block_until_ready(pos_extraction(x, w1s, b1s, w2s, b2s))  # x donated
    assert out.shape == (B, C, G) and out.dtype == jnp.float32
    err = float(jnp.max(jnp.abs(out - ref)))
    assert err < 1e-1, err   # bf16 MXU operands vs f32 reference

    # --- bf16 activation I/O (half the activation HBM bandwidth) ---
    x16 = jax.random.normal(kx2, (B, C, G), jnp.float32)
    ref16 = jax.block_until_ready(pos_extraction_ref(x16, w1s, b1s, w2s, b2s))
    out16 = jax.block_until_ready(
        pos_extraction(x16.astype(jnp.bfloat16), w1s, b1s, w2s, b2s))
    assert out16.dtype == jnp.bfloat16
    err16 = float(jnp.max(jnp.abs(out16.astype(jnp.float32) - ref16)))
    assert err16 < 2e-1, err16

    # --- >2 blocks: exercises the fori_loop (bounded live range) path ---
    w1s3, b1s3, w2s3, b2s3 = init_params(jax.random.PRNGKey(1), 3, C)
    x3 = jax.random.normal(jax.random.PRNGKey(2), (B, C, G), jnp.float32)
    ref3 = jax.block_until_ready(pos_extraction_ref(x3, w1s3, b1s3, w2s3, b2s3))
    out3 = jax.block_until_ready(pos_extraction(x3, w1s3, b1s3, w2s3, b2s3))
    err3 = float(jnp.max(jnp.abs(out3 - ref3)))
    assert err3 < 1.25e-1, err3

    print("KERNEL_OK")
</pallas_src>

<mosaic_0001>
module attributes {stable_mosaic.version = 11 : i64} {
  func.func @_fused_blocks_kernel(%arg0: i32, %arg1: i32, %arg2: memref<1x32x256xf32, #tpu.memory_space<vmem>>, %arg3: memref<2x32x32xbf16, #tpu.memory_space<vmem>>, %arg4: memref<2x32x1xf32, #tpu.memory_space<vmem>>, %arg5: memref<2x32x32xbf16, #tpu.memory_space<vmem>>, %arg6: memref<2x32x1xf32, #tpu.memory_space<vmem>>, %arg7: memref<1x32x256xf32, #tpu.memory_space<vmem>>) attributes {dimension_semantics = [#tpu.dimension_semantics<parallel>, #tpu.dimension_semantics<parallel>], iteration_bounds = array<i64: 2, 1>, scalar_prefetch = 0 : i64, scratch_operands = 0 : i64, tpu.core_type = #tpu.core_type<tc>, window_params = [{transform_indices = @transform_0, window_bounds = array<i64: 1, 32, 256>}, {pipeline_mode = #tpu.pipeline_mode<synchronous>, transform_indices = @transform_1, window_bounds = array<i64: 2, 32, 32>}, {pipeline_mode = #tpu.pipeline_mode<synchronous>, transform_indices = @transform_2, window_bounds = array<i64: 2, 32, 1>}, {pipeline_mode = #tpu.pipeline_mode<synchronous>, transform_indices = @transform_3, window_bounds = array<i64: 2, 32, 32>}, {pipeline_mode = #tpu.pipeline_mode<synchronous>, transform_indices = @transform_4, window_bounds = array<i64: 2, 32, 1>}, {transform_indices = @transform_5, window_bounds = array<i64: 1, 32, 256>}]} {
    %c0 = arith.constant 0 : index
    %c0_0 = arith.constant 0 : index
    %c0_1 = arith.constant 0 : index
    %0 = vector.load %arg2[%c0, %c0_0, %c0_1] : memref<1x32x256xf32, #tpu.memory_space<vmem>>, vector<1x32x256xf32>
    %1 = vector.shape_cast %0 : vector<1x32x256xf32> to vector<32x256xf32>
    %c0_2 = arith.constant 0 : index
    %c0_3 = arith.constant 0 : index
    %c0_4 = arith.constant 0 : index
    %2 = vector.load %arg3[%c0_2, %c0_3, %c0_4] : memref<2x32x32xbf16, #tpu.memory_space<vmem>>, vector<1x32x32xbf16>
    %3 = vector.shape_cast %2 : vector<1x32x32xbf16> to vector<32x32xbf16>
    %4 = arith.truncf %1 : vector<32x256xf32> to vector<32x256xbf16>
    %cst = arith.constant dense<0.000000e+00> : vector<32x256xf32>
    %5 = tpu.matmul %3, %4, %cst {dimension_numbers = #tpu.dot_dimension_numbers<[1], [0], [0], [1], [0, 0, 1, 1], [], []>} : vector<32x32xbf16>, vector<32x256xbf16>, vector<32x256xf32> -> vector<32x256xf32>
    %c0_5 = arith.constant 0 : index
    %c0_6 = arith.constant 0 : index
    %c0_7 = arith.constant 0 : index
    %6 = vector.load %arg4[%c0_5, %c0_6, %c0_7] : memref<2x32x1xf32, #tpu.memory_space<vmem>>, vector<1x32x1xf32>
    %7 = vector.shape_cast %6 : vector<1x32x1xf32> to vector<32x1xf32>
    %8 = vector.broadcast %7 : vector<32x1xf32> to vector<32x256xf32>
    %9 = arith.addf %5, %8 : vector<32x256xf32>
    %cst_8 = arith.constant 0.000000e+00 : f32
    %10 = vector.broadcast %cst_8 : f32 to vector<32x256xf32>
    %11 = arith.maximumf %9, %10 : vector<32x256xf32>
    %c0_9 = arith.constant 0 : index
    %c0_10 = arith.constant 0 : index
    %c0_11 = arith.constant 0 : index
    %12 = vector.load %arg5[%c0_9, %c0_10, %c0_11] : memref<2x32x32xbf16, #tpu.memory_space<vmem>>, vector<1x32x32xbf16>
    %13 = vector.shape_cast %12 : vector<1x32x32xbf16> to vector<32x32xbf16>
    %14 = arith.truncf %11 : vector<32x256xf32> to vector<32x256xbf16>
    %cst_12 = arith.constant dense<0.000000e+00> : vector<32x256xf32>
    %15 = tpu.matmul %13, %14, %cst_12 {dimension_numbers = #tpu.dot_dimension_numbers<[1], [0], [0], [1], [0, 0, 1, 1], [], []>} : vector<32x32xbf16>, vector<32x256xbf16>, vector<32x256xf32> -> vector<32x256xf32>
    %c0_13 = arith.constant 0 : index
    %c0_14 = arith.constant 0 : index
    %c0_15 = arith.constant 0 : index
    %16 = vector.load %arg6[%c0_13, %c0_14, %c0_15] : memref<2x32x1xf32, #tpu.memory_space<vmem>>, vector<1x32x1xf32>
    %17 = vector.shape_cast %16 : vector<1x32x1xf32> to vector<32x1xf32>
    %18 = vector.broadcast %17 : vector<32x1xf32> to vector<32x256xf32>
    %19 = arith.addf %15, %18 : vector<32x256xf32>
    %20 = arith.addf %19, %1 : vector<32x256xf32>
    %cst_16 = arith.constant 0.000000e+00 : f32
    %21 = vector.broadcast %cst_16 : f32 to vector<32x256xf32>
    %22 = arith.maximumf %20, %21 : vector<32x256xf32>
    %c1 = arith.constant 1 : index
    %c0_17 = arith.constant 0 : index
    %c0_18 = arith.constant 0 : index
    %23 = vector.load %arg3[%c1, %c0_17, %c0_18] : memref<2x32x32xbf16, #tpu.memory_space<vmem>>, vector<1x32x32xbf16>
    %24 = vector.shape_cast %23 : vector<1x32x32xbf16> to vector<32x32xbf16>
    %25 = arith.truncf %22 : vector<32x256xf32> to vector<32x256xbf16>
    %cst_19 = arith.constant dense<0.000000e+00> : vector<32x256xf32>
    %26 = tpu.matmul %24, %25, %cst_19 {dimension_numbers = #tpu.dot_dimension_numbers<[1], [0], [0], [1], [0, 0, 1, 1], [], []>} : vector<32x32xbf16>, vector<32x256xbf16>, vector<32x256xf32> -> vector<32x256xf32>
    %c1_20 = arith.constant 1 : index
    %c0_21 = arith.constant 0 : index
    %c0_22 = arith.constant 0 : index
    %27 = vector.load %arg4[%c1_20, %c0_21, %c0_22] : memref<2x32x1xf32, #tpu.memory_space<vmem>>, vector<1x32x1xf32>
    %28 = vector.shape_cast %27 : vector<1x32x1xf32> to vector<32x1xf32>
    %29 = vector.broadcast %28 : vector<32x1xf32> to vector<32x256xf32>
    %30 = arith.addf %26, %29 : vector<32x256xf32>
    %cst_23 = arith.constant 0.000000e+00 : f32
    %31 = vector.broadcast %cst_23 : f32 to vector<32x256xf32>
    %32 = arith.maximumf %30, %31 : vector<32x256xf32>
    %c1_24 = arith.constant 1 : index
    %c0_25 = arith.constant 0 : index
    %c0_26 = arith.constant 0 : index
    %33 = vector.load %arg5[%c1_24, %c0_25, %c0_26] : memref<2x32x32xbf16, #tpu.memory_space<vmem>>, vector<1x32x32xbf16>
    %34 = vector.shape_cast %33 : vector<1x32x32xbf16> to vector<32x32xbf16>
    %35 = arith.truncf %32 : vector<32x256xf32> to vector<32x256xbf16>
    %cst_27 = arith.constant dense<0.000000e+00> : vector<32x256xf32>
    %36 = tpu.matmul %34, %35, %cst_27 {dimension_numbers = #tpu.dot_dimension_numbers<[1], [0], [0], [1], [0, 0, 1, 1], [], []>} : vector<32x32xbf16>, vector<32x256xbf16>, vector<32x256xf32> -> vector<32x256xf32>
    %c1_28 = arith.constant 1 : index
    %c0_29 = arith.constant 0 : index
    %c0_30 = arith.constant 0 : index
    %37 = vector.load %arg6[%c1_28, %c0_29, %c0_30] : memref<2x32x1xf32, #tpu.memory_space<vmem>>, vector<1x32x1xf32>
    %38 = vector.shape_cast %37 : vector<1x32x1xf32> to vector<32x1xf32>
    %39 = vector.broadcast %38 : vector<32x1xf32> to vector<32x256xf32>
    %40 = arith.addf %36, %39 : vector<32x256xf32>
    %41 = arith.addf %40, %22 : vector<32x256xf32>
    %cst_31 = arith.constant 0.000000e+00 : f32
    %42 = vector.broadcast %cst_31 : f32 to vector<32x256xf32>
    %43 = arith.maximumf %41, %42 : vector<32x256xf32>
    %c0_32 = arith.constant 0 : index
    %c0_33 = arith.constant 0 : index
    %c0_34 = arith.constant 0 : index
    %44 = vector.load %arg7[%c0_32, %c0_33, %c0_34] : memref<1x32x256xf32, #tpu.memory_space<vmem>>, vector<1x32x256xf32>
    %45 = vector.shape_cast %44 : vector<1x32x256xf32> to vector<32x256xf32>
    %46 = vector.shape_cast %43 : vector<32x256xf32> to vector<1x32x256xf32>
    tpu.vector_store %arg7[%c0_32, %c0_33, %c0_34], %46 {strides = array<i32>} : memref<1x32x256xf32, #tpu.memory_space<vmem>>, vector<1x32x256xf32>,
    return
  }
  func.func @transform_0(%arg0: i32, %arg1: i32) -> (i32, i32, i32) {
    %c0_i32 = arith.constant 0 : i32
    %c0_i32_0 = arith.constant 0 : i32
    return %arg0, %c0_i32, %arg1 : i32, i32, i32
  }
  func.func @transform_1(%arg0: i32, %arg1: i32) -> (i32, i32, i32) {
    %c0_i32 = arith.constant 0 : i32
    %c0_i32_0 = arith.constant 0 : i32
    %c0_i32_1 = arith.constant 0 : i32
    %c0_i32_2 = arith.constant 0 : i32
    return %c0_i32, %c0_i32_0, %c0_i32_1 : i32, i32, i32
  }
  func.func @transform_2(%arg0: i32, %arg1: i32) -> (i32, i32, i32) {
    %c0_i32 = arith.constant 0 : i32
    %c0_i32_0 = arith.constant 0 : i32
    %c0_i32_1 = arith.constant 0 : i32
    %c0_i32_2 = arith.constant 0 : i32
    return %c0_i32, %c0_i32_0, %c0_i32_1 : i32, i32, i32
  }
  func.func @transform_3(%arg0: i32, %arg1: i32) -> (i32, i32, i32) {
    %c0_i32 = arith.constant 0 : i32
    %c0_i32_0 = arith.constant 0 : i32
    %c0_i32_1 = arith.constant 0 : i32
    %c0_i32_2 = arith.constant 0 : i32
    return %c0_i32, %c0_i32_0, %c0_i32_1 : i32, i32, i32
  }
  func.func @transform_4(%arg0: i32, %arg1: i32) -> (i32, i32, i32) {
    %c0_i32 = arith.constant 0 : i32
    %c0_i32_0 = arith.constant 0 : i32
    %c0_i32_1 = arith.constant 0 : i32
    %c0_i32_2 = arith.constant 0 : i32
    return %c0_i32, %c0_i32_0, %c0_i32_1 : i32, i32, i32
  }
  func.func @transform_5(%arg0: i32, %arg1: i32) -> (i32, i32, i32) {
    %c0_i32 = arith.constant 0 : i32
    %c0_i32_0 = arith.constant 0 : i32
    return %arg0, %c0_i32, %arg1 : i32, i32, i32
  }
}

</mosaic_0001>

<bundles_post_ra>
// kernel: pos_extraction.1
= control target key start
LH: loop header
LB: loop body
LE: loop exit
PB: predicated region body
PF: predicated region fallthrough
CT: control target
= control target key end

     0   :  { %10 = vsyncpa [#allocation3], 0  ;;  %s1485_s0 = inlined_call_operand.hbm [shape: f32[2,32,256], index: 0, kind: input, shape index: {}, may-alias: {0,5}]   ;;  %s1486_s1 = inlined_call_operand.vmem [shape: bf16[2,32,32], index: 1, kind: input, shape index: {}]   ;;  %s1487_s2 = inlined_call_operand.vmem [shape: f32[2,32,1], index: 2, kind: input, shape index: {}]   ;;  %s1488_s3 = inlined_call_operand.vmem [shape: bf16[2,32,32], index: 3, kind: input, shape index: {}]   ;;  %s1489_s4 = inlined_call_operand.vmem [shape: f32[2,32,1], index: 4, kind: input, shape index: {}]   ;;  %s1490_s5 = inlined_call_operand.hbm [shape: f32[2,32,256], index: 5, kind: output, shape index: {}, may-alias: {0,5}]  }
   0x1   :  { %12 = vsyncpa [#allocation3 + $0x1], 0 }
   0x2   :  { %13 = vsyncpa [#allocation4], 0 }
   0x3   :  { %15 = vsyncpa [#allocation4 + $0x1], 0  ;;  %s1117_s18 = smov 0   ;;  %s1119_s19 = smov 0  }
   0x4   :  { %s1121_s20 = smov 0   ;;  %s1123_s21 = smov 0  }
   0x5   :  { %s1125_s22 = smov 0   ;;  %s1127_s23 = smov 0  }
   0x6 LB: > { %s840_s24 = sadd.s32 4294967295, %s1078_s23   ;;  %s841_s25 = sadd.s32 4294967294, %s1078_s23   ;;  %s1078_s23 = sphi %s1127_s23, %s21_s23   ;;  %s1074_s22 = sphi %s1125_s22, %s1505_s22   ;;  %s1070_s21 = sphi %s1123_s21, %s1504_s21   ;;  %s1066_s20 = sphi %s1121_s20, %s1503_s20   ;;  %s1062_s19 = sphi %s1119_s19, %s1502_s19   ;;  %s1058_s18 = sphi %s1117_s18, %s1501_s18  }
   0x7   : > { %s33_s26 = sadd.s32 1, %s1074_s22  ;;  %s42_s27 = sadd.s32 1, %s1066_s20 }
   0x8   : > { %p35_p0 = scmp.ge.s32.totalorder %s33_s26, 2  ;;  %p49_p1 = scmp.ne.s32.totalorder %s1066_s20, %s1062_s19 }
   0x9   : > { %p50_p2 = scmp.eq.s32.totalorder %s1078_s23, 0  ;;  %p55_p3 = scmp.ne.s32.totalorder %s1062_s19, %s1058_s18 }
   0xa   : > { %s1507_s26 = smov (%p35_p0, %s33_s26), 0  ;;  %p56_p5 = scmp.eq.s32.totalorder %s840_s24, 0 }
   0xb   : > { %p1158_p4 = por %p50_p2, %p49_p1  ;;  %s37_s29 = ssub.s32 %s1074_s22, %s1507_s26 }
   0xc   : > { %p165_p6 = scmp.eq.s32.totalorder %s840_s24, 1  ;;  %p40_p7 = scmp.eq.s32.totalorder %s37_s29, 0 }
   0xd   : > { %p1164_p8 = por %p56_p5, %p55_p3  ;;  %p171_p10 = scmp.eq.s32.totalorder %s841_s25, 1 }
   0xe   : > { %p1168_p9 = por %p165_p6, %p49_p1  ;;  %p901_p13 = scmp.lt.s32.totalorder %s1078_s23, 2 }
   0xf   : > { %s1173_s7 = scalar_select %p40_p7, %s1066_s20, %s42_s27  }
  0x10   : > { %s1494_s6 = scalar_select %p1168_p9, 1, 0 }
  0x11   : > { %p1175_p11 = por %p171_p10, %p55_p3  ;;  %s203_s9 = sand.u32 1, %s1066_s20  }
  0x12   : > { %s844_s10 = sshll.u32 %s203_s9, 6  ;;  %s887_s11 = sshll.u32 %s1074_s22, 10 }
  0x13   : > { %s1495_s8 = scalar_select %p1175_p11, 1, 0 }
  0x14   : > { %s1186_s14 = scalar_lea.hbm %s1485_s0, %s887_s11  ;;  %s207_s15 = scalar_lea.vmem [#allocation2], %s844_s10 }
  0x15   : > { %s216_s16 = sshll.u32 %s207_s15, 4  ;;  %p1192_p0 = pnand %p901_p13, %p1158_p4  ;;  %s1188_s16 = int_to_ptr.vmem [resolvable:$true] %s216_s16 }
  0x16   : > { %s1197_s24 = scalar_lea.sflag [#allocation3], %s203_s9  ;;  %s966_s25 = scalar_lea.hbm %s1186_s14, 1024 }
  0x17   : > { %p967_p2 = scmp.ne.s32.totalorder %s1186_s14, %s966_s25  ;;  %p968_p3 = pneg %p1192_p0 }
  0x18   : > { %s971_s28 = scalar_lea.hbm %s1485_s0, 2048  ;;  %p972_p4 = scmp.lt.u32.totalorder %s1186_s14, %s1485_s0 }
  0x19   : > { %p969_p5 = pnand %p968_p3, %p967_p2  ;;  %p973_p7 = scmp.lt.u32.totalorder %s971_s28, %s966_s25 }
  0x1a   : > { %p975_p13 = scmp.lt.u32.totalorder %s966_s25, %s1186_s14 }
  0x1b   : > { %p970_p6 = pneg %p969_p5  ;;  %p974_p10 = por %p973_p7, %p972_p4 }
  0x1d   : > { %p976_p12 = por %p975_p13, %p974_p10 }
  0x1f   : > { %p977_p1 = pnand %p976_p12, %p970_p6 }
  0x21   : > { %980 = shalt.err (!%p977_p1)
}
  0x22   : > { %s981_s9 = scalar_lea.vmem %s1188_s16, 1024  ;;  %s1080_s12 = smov [#allocation2]  }
  0x23   : > { %p982_p2 = scmp.ne.s32.totalorder %s1188_s16, %s981_s9  ;;  %s986_s13 = sshll.u32 %s1080_s12, 4  ;;  %s987_s13 = int_to_ptr.vmem [resolvable:$false] %s986_s13 }
  0x24   : > { %s988_s15 = scalar_lea.vmem %s987_s13, 2048  ;;  %p989_p9 = scmp.lt.s32.totalorder %s1188_s16, %s987_s13 }
  0x25   : > { %p984_p5 = pnand %p982_p2, %p968_p3  ;;  %p990_p4 = scmp.lt.s32.totalorder %s988_s15, %s981_s9 }
  0x27   : > { %p985_p11 = pneg %p984_p5  ;;  %p991_p7 = por %p990_p4, %p989_p9 }
  0x29   : > { %p992_p10 = pnand %p991_p7, %p985_p11 }
  0x2b   : > { %995 = shalt.err (!%p992_p10)
}
  0x2c   : > { %s1081_s25 = smov 256   ;;  %s1082_s27 = smov 16  }
  0x2d   : > { %896 = dma.hbm_to_vmem [thread:$0]  (!%p1192_p0), %s1186_s14, 1024, %s1188_s16, %s1197_s24, %s1081_s25, %s1081_s25, %s1082_s27  }
  0x2e   : > { %p224_p12 = scmp.lt.s32.totalorder %s1078_s23, 3  ;;  %p1497_p1 = scmp.ge.s32.totalorder %s1078_s23, 1 }
  0x30   : > { %p225_p3 = pnand %p1497_p1, %p224_p12 }
  0x31   : > { %s1229_s29 = sand.u32 (!%p225_p3), 1, %s1062_s19  }
  0x32   : > { %228 = sbr.rel (%p225_p3) target bundleno = 1014 (0x3f6), region = 40  ;;  %s848_s28 = sshll.u32 (!%p225_p3), %s1229_s29, 6 }
  0x33   : > { %s231_s10 = scalar_lea.sflag (!%p225_p3), [#allocation3], %s1229_s29  ;;  %s234_s11 = scalar_lea.vmem (!%p225_p3), [#allocation2], %s848_s28 }
  0x39   : > { %1049 = dma.done.wait (%p1164_p8), %s231_s10, 1024  }
  0x3a   : > { %1051 = vsyncadd (%p1164_p8), %s231_s10, 4294966272  ;;  %v1083_v0 = vmov 0   ;;  %v1243_v1 = vld [vmem:[%s234_s11 + $0x8] sm:$0xff]  ;;  %v1245_v2 = vld [vmem:[%s234_s11 + $0x18] sm:$0xff]  ;;  %vm314_vm0 = vcmask 261120   ;;  %s1411_s25 = scalar_lea.vmem [#allocation5], %s848_s28 }
  0x3b   : > { %353 = vmatprep.mubr.bf16.mxu0 %v1083_v0  ;;  %956 = vset.pattern.permute.xlu0 %v1083_v0  ;;  %v1247_v3 = vld [vmem:[%s234_s11] sm:$0xff]  ;;  %v277_v4 = vpack.c.bf16 %v1245_v2, %v1243_v1  ;;  %v1251_v5 = vld [vmem:[%s234_s11 + $0x10] sm:$0xff]  ;;  %v1253_v6 = vld [vmem:[%s234_s11 + $0x28] sm:$0xff]  ;;  %s753_s28 = sshll.u32 %s1411_s25, 4  ;;  %s888_s27 = sshll.u32 %s1070_s21, 10  ;;  %s1425_s28 = int_to_ptr.vmem [resolvable:$true] %s753_s28 }
  0x3c   : > { %957 = vset.pattern.permute.xlu1 %v1083_v0  ;;  %462 = vmatprep.mubr.bf16.mxu1 %v1083_v0  ;;  %v1255_v7 = vld [vmem:[%s234_s11 + $0x38] sm:$0xff]  ;;  %v276_v8 = vpack.c.bf16 %v1251_v5, %v1247_v3  ;;  %v1261_v10 = vld [vmem:[%s234_s11 + $0x20] sm:$0xff]  ;;  %v1263_v11 = vld [vmem:[%s234_s11 + $0x30] sm:$0xff]  ;;  %s1433_s21 = scalar_lea.hbm %s1490_s5, %s888_s27  ;;  %s738_s30 = scalar_lea.sflag [#allocation4], %s1229_s29 }
  0x3d   : > { %v279_v9 = vpack.c.bf16 %v1255_v7, %v1253_v6  ;;  %321 = vmatprep.subr.bf16.mxu0 %v277_v4  ;;  %v278_v12 = vpack.c.bf16 %v1263_v11, %v1261_v10  ;;  %v280_v13 = vld [vmem:[%s1487_s2] sm:$0xff]  ;;  %v282_v14 = vld [vmem:[%s1487_s2 + $0x10] sm:$0xff]  ;;  %v281_v15 = vld [vmem:[%s1487_s2 + $0x8] sm:$0xff]  ;;  %s996_s14 = scalar_lea.vmem %s1425_s28, 1024  ;;  %p1498_p9 = scmp.ne.s32.totalorder %s1494_s6, 0 }
  0x3e   : > { %322 = vmatpush1.bf16.msra.mxu0 %v276_v8  ;;  %286 = vperm.xlu0 %956, %v280_v13   ;;  %v958_v16 = vld [vmem:[%s1486_s1] sm:$0xff]   ;;  %v283_v17 = vld [vmem:[%s1487_s2 + $0x18] sm:$0xff]  ;;  %v391_v19 = vld [vmem:[%s1489_s4 + $0x8] sm:$0xff]  ;;  %p997_p8 = scmp.ne.s32.totalorder %s1425_s28, %s996_s14  ;;  %s1084_s16 = smov [#allocation5]  }
  0x3f   : > { %323 = vmatprep.subr.bf16.mxu0 %v279_v9  ;;  %296 = vperm.xlu1 %957, %v282_v14   ;;  %v390_v18 = vld [vmem:[%s1489_s4] sm:$0xff]  ;;  %v392_v20 = vld [vmem:[%s1489_s4 + $0x10] sm:$0xff]  ;;  %v959_v21 = vld [vmem:[%s1486_s1 + $0x8] sm:$0xff]   ;;  %s1000_s17 = sshll.u32 %s1084_s16, 4  ;;  %s1001_s17 = int_to_ptr.vmem [resolvable:$false] %s1000_s17 }
  0x40   : > { %v393_v22 = vld [vmem:[%s1489_s4 + $0x18] sm:$0xff]  ;;  %v862_v23 = vld [vmem:[%s1487_s2 + $0x20] sm:$0xff]  ;;  %v863_v24 = vld [vmem:[%s1487_s2 + $0x28] sm:$0xff]  ;;  %p998_p11 = pnand %p997_p8, %p1498_p9  ;;  %s1002_s24 = scalar_lea.vmem %s1001_s17, 2048 }
  0x41   : > { %v864_v25 = vld [vmem:[%s1487_s2 + $0x30] sm:$0xff]  ;;  %v865_v26 = vld [vmem:[%s1487_s2 + $0x38] sm:$0xff]  ;;  %v874_v27 = vld [vmem:[%s1489_s4 + $0x20] sm:$0xff]  ;;  %p1003_p6 = scmp.lt.s32.totalorder %s1425_s28, %s1001_s17  ;;  %p1004_p13 = scmp.lt.s32.totalorder %s1002_s24, %s996_s14 }
  0x42   : > { %324 = vmatpush1.bf16.msra.mxu0 %v278_v12  ;;  %291 = vperm.xlu0 %956, %v281_v15   ;;  %v875_v28 = vld [vmem:[%s1489_s4 + $0x28] sm:$0xff]  ;;  %v876_v29 = vld [vmem:[%s1489_s4 + $0x30] sm:$0xff]  ;;  %v877_v30 = vld [vmem:[%s1489_s4 + $0x38] sm:$0xff]  ;;  %p999_p0 = pneg %p998_p11 }
  0x43   : > { %301 = vperm.xlu1 %957, %v283_v17   ;;  %v960_v63 = vld [vmem:[%s1488_s3] sm:$0xff]   ;;  %v961_v4 = vld [vmem:[%s1488_s3 + $0x8] sm:$0xff]   ;;  %p1005_p2 = por %p1004_p13, %p1003_p6 }
  0x45   : > { %852 = vmatmul.mubr.msk.bf16.vlgmr.msra.gmra.mrb[0].mxu0 %vm314_vm0, %v958_v16  ;;  %p1006_p5 = pnand %p1005_p2, %p999_p0 }
  0x46   : > { %363 = vmatprep.mubr.bf16.mxu0 %v1083_v0  ;;  %396 = vperm.xlu0 %956, %v390_v18  }
  0x47   : > { %401 = vperm.xlu1 %957, %v391_v19  }
  0x4a   : > { %406 = vperm.xlu0 %956, %v392_v20  }
  0x4b   : > { %411 = vperm.xlu1 %957, %v393_v22  }
  0x4d   : > { %853 = vmatmul.mubr.msk.bf16.gmra.mrb[4].mxu0 %vm314_vm0, %v959_v21 }
  0x4e   : > { %581 = vmatprep.mubr.bf16.mxu0 %v1083_v0  ;;  %515 = vperm.xlu0 %956, %v862_v23  }
  0x4f   : > { %520 = vperm.xlu1 %957, %v863_v24  }
  0x52   : > { %525 = vperm.xlu0 %956, %v864_v25  }
  0x53   : > { %530 = vperm.xlu1 %957, %v865_v26  }
  0x56   : > { %626 = vperm.xlu0 %956, %v874_v27  }
  0x57   : > { %631 = vperm.xlu1 %957, %v875_v28  }
  0x5a   : > { %636 = vperm.xlu0 %956, %v876_v29  }
  0x5b   : > { %641 = vperm.xlu1 %957, %v877_v30  }
  0xbd   : > { %v287_v31 = vpop.permute.xlu0 %286 }
  0xbe   : > { %v297_v40 = vpop.permute.xlu1 %296 }
  0xc1   : > { %v292_v35 = vpop.permute.xlu0 %291 }
  0xc2   : > { %v302_v51 = vpop.permute.xlu1 %301 }
  0xc5   : > { %v397_v8 = vpop.permute.xlu0 %396 }
  0xc6   : > { %v402_v14 = vpop.permute.xlu1 %401 }
  0xc9   : > { %v407_v25 = vpop.permute.xlu0 %406 }
 0x118   : > { %v355_v32 = vpop.f32.mrb[0].mxu0 }
 0x119   : > { %v356_v33 = vadd.f32 %v355_v32, %v287_v31  ;;  %v357_v34 = vpop.f32.mrb[1].mxu0 }
 0x11a   : > { %v358_v36 = vadd.f32 %v357_v34, %v287_v31  ;;  %v359_v37 = vpop.f32.mrb[2].mxu0 }
 0x11b   : > { %v360_v38 = vadd.f32 %v359_v37, %v292_v35  ;;  %v361_v39 = vpop.f32.mrb[3].mxu0  ;;  %v374_v42 = vmax.f32 %v356_v33, 0.0 }
 0x11c   : > { %v362_v41 = vadd.f32 %v361_v39, %v292_v35  ;;  %v375_v44 = vmax.f32 %v358_v36, 0.0 }
 0x11d   : > { %v376_v43 = vmax.f32 %v360_v38, 0.0 }
 0x11e   : > { %v377_v45 = vmax.f32 %v362_v41, 0.0 }
 0x11f   : > { %v386_v46 = vpack.c.bf16 %v376_v43, %v374_v42  ;;  %v963_v43 = vld [vmem:[%s1486_s1 + $0x18] sm:$0xff]  }
 0x120   : > { %v365_v47 = vpop.f32.mrb[4].mxu0  ;;  %v387_v48 = vpack.c.bf16 %v377_v45, %v375_v44  ;;  %v516_v44 = vpop.permute.xlu0 %515 }
 0x121   : > { %v366_v49 = vadd.f32 %v365_v47, %v297_v40  ;;  %v367_v50 = vpop.f32.mrb[5].mxu0 }
 0x122   : > { %v368_v52 = vadd.f32 %v367_v50, %v297_v40  ;;  %v369_v53 = vpop.f32.mrb[6].mxu0  ;;  %430 = vmatprep.subr.bf16.mxu1 %v387_v48 }
 0x123   : > { %v370_v54 = vadd.f32 %v369_v53, %v302_v51  ;;  %v371_v55 = vpop.f32.mrb[7].mxu0  ;;  %431 = vmatpush1.bf16.msra.mxu1 %v386_v46  ;;  %v378_v57 = vmax.f32 %v366_v49, 0.0 }
 0x124   : > { %v372_v56 = vadd.f32 %v371_v55, %v302_v51  ;;  %v379_v59 = vmax.f32 %v368_v52, 0.0 }
 0x125   : > { %v380_v58 = vmax.f32 %v370_v54, 0.0 }
 0x126   : > { %v381_v60 = vmax.f32 %v372_v56, 0.0 }
 0x127   : > { %v388_v61 = vpack.c.bf16 %v380_v58, %v378_v57 }
 0x128   : > { %v389_v62 = vpack.c.bf16 %v381_v60, %v379_v59  ;;  %v526_v59 = vpop.permute.xlu0 %525 }
 0x12a   : > { %432 = vmatprep.subr.bf16.mxu1 %v389_v62 }
 0x12b   : > { %433 = vmatpush1.bf16.msra.mxu1 %v388_v61 }
 0x12e   : > { %856 = vmatmul.mubr.msk.bf16.vlgmr.msra.gmra.mrb[0].mxu1 %vm314_vm0, %v960_v63 }
 0x12f   : > { %472 = vmatprep.mubr.bf16.mxu1 %v1083_v0 }
 0x136   : > { %857 = vmatmul.mubr.msk.bf16.gmra.mrb[4].mxu1 %vm314_vm0, %v961_v4 }
 0x137   : > { %692 = vmatprep.mubr.bf16.mxu1 %v1083_v0 }
 0x201   : > { %v464_v9 = vpop.f32.mrb[0].mxu1 }
 0x202   : > { %v465_v12 = vadd.f32 %v464_v9, %v397_v8  ;;  %v466_v13 = vpop.f32.mrb[1].mxu1 }
 0x203   : > { %v467_v15 = vadd.f32 %v466_v13, %v397_v8  ;;  %v468_v16 = vpop.f32.mrb[2].mxu1 }
 0x204   : > { %v469_v17 = vadd.f32 %v468_v16, %v402_v14  ;;  %v470_v18 = vpop.f32.mrb[3].mxu1  ;;  %v1339_v21 = vadd.f32 %v465_v12, %v1247_v3  ;;  %v412_v3 = vpop.permute.xlu1 %411 }
 0x205   : > { %v1336_v19 = vadd.f32 %v467_v15, %v1243_v1  ;;  %v471_v20 = vadd.f32 %v470_v18, %v402_v14 }
 0x206   : > { %v1342_v22 = vadd.f32 %v469_v17, %v1251_v5  ;;  %v491_v1 = vmax.f32 %v1339_v21, 0.0 }
 0x207   : > { %v1345_v23 = vadd.f32 %v471_v20, %v1245_v2  ;;  %v492_v26 = vmax.f32 %v1336_v19, 0.0 }
 0x208   : > { %v493_v24 = vmax.f32 %v1342_v22, 0.0  ;;  %v521_v48 = vpop.permute.xlu1 %520 }
 0x209   : > { %v494_v27 = vmax.f32 %v1345_v23, 0.0  ;;  %v474_v28 = vpop.f32.mrb[4].mxu1 }
 0x20a   : > { %v475_v29 = vadd.f32 %v474_v28, %v407_v25  ;;  %v476_v30 = vpop.f32.mrb[5].mxu1  ;;  %v504_v5 = vpack.c.bf16 %v493_v24, %v491_v1  ;;  %v964_v28 = vld [vmem:[%s1488_s3 + $0x10] sm:$0xff]  }
 0x20b   : > { %v477_v31 = vadd.f32 %v476_v30, %v407_v25  ;;  %v478_v32 = vpop.f32.mrb[6].mxu1  ;;  %v505_v2 = vpack.c.bf16 %v494_v27, %v492_v26  ;;  %v627_v30 = vpop.permute.xlu0 %626 }
 0x20c   : > { %v479_v33 = vadd.f32 %v478_v32, %v412_v3  ;;  %v480_v34 = vpop.f32.mrb[7].mxu1  ;;  %v1363_v37 = vadd.f32 %v475_v29, %v1261_v10  ;;  %v531_v4 = vpop.permute.xlu1 %530  ;;  %v965_v29 = vld [vmem:[%s1488_s3 + $0x18] sm:$0xff]  }
 0x20d   : > { %v1360_v35 = vadd.f32 %v477_v31, %v1253_v6  ;;  %v481_v36 = vadd.f32 %v480_v34, %v412_v3  ;;  %549 = vmatprep.subr.bf16.mxu0 %v505_v2 }
 0x20e   : > { %v1366_v38 = vadd.f32 %v479_v33, %v1263_v11  ;;  %550 = vmatpush1.bf16.msra.mxu0 %v504_v5  ;;  %v495_v6 = vmax.f32 %v1363_v37, 0.0 }
 0x20f   : > { %v1369_v39 = vadd.f32 %v481_v36, %v1255_v7  ;;  %v496_v41 = vmax.f32 %v1360_v35, 0.0  ;;  %v962_v7 = vld [vmem:[%s1486_s1 + $0x10] sm:$0xff]   ;;  %v637_v21 = vpop.permute.xlu0 %636 }
 0x210   : > { %v497_v40 = vmax.f32 %v1366_v38, 0.0  ;;  %v632_v2 = vpop.permute.xlu1 %631 }
 0x211   : > { %v498_v42 = vmax.f32 %v1369_v39, 0.0 }
 0x212   : > { %v506_v11 = vpack.c.bf16 %v497_v40, %v495_v6 }
 0x213   : > { %v507_v10 = vpack.c.bf16 %v498_v42, %v496_v41 }
 0x214   : > { %v642_v23 = vpop.permute.xlu1 %641 }
 0x215   : > { %551 = vmatprep.subr.bf16.mxu0 %v507_v10 }
 0x216   : > { %552 = vmatpush1.bf16.msra.mxu0 %v506_v11 }
 0x219   : > { %868 = vmatmul.mubr.msk.bf16.vlgmr.msra.gmra.mrb[8].mxu0 %vm314_vm0, %v962_v7 }
 0x21a   : > { %591 = vmatprep.mubr.bf16.mxu0 %v1083_v0 }
 0x221   : > { %869 = vmatmul.mubr.msk.bf16.gmra.mrb[12].mxu0 %vm314_vm0, %v963_v43 }
 0x2ec   : > { %v583_v45 = vpop.f32.mrb[8].mxu0 }
 0x2ed   : > { %v584_v46 = vadd.f32 %v583_v45, %v516_v44  ;;  %v585_v47 = vpop.f32.mrb[9].mxu0 }
 0x2ee   : > { %v586_v49 = vadd.f32 %v585_v47, %v516_v44  ;;  %v587_v50 = vpop.f32.mrb[10].mxu0 }
 0x2ef   : > { %v588_v51 = vadd.f32 %v587_v50, %v521_v48  ;;  %v589_v52 = vpop.f32.mrb[11].mxu0  ;;  %v602_v54 = vmax.f32 %v584_v46, 0.0 }
 0x2f0   : > { %v590_v53 = vadd.f32 %v589_v52, %v521_v48  ;;  %v603_v56 = vmax.f32 %v586_v49, 0.0 }
 0x2f1   : > { %v604_v55 = vmax.f32 %v588_v51, 0.0 }
 0x2f2   : > { %v605_v57 = vmax.f32 %v590_v53, 0.0 }
 0x2f3   : > { %v615_v58 = vpack.c.bf16 %v604_v55, %v602_v54 }
 0x2f4   : > { %v616_v60 = vpack.c.bf16 %v605_v57, %v603_v56  ;;  %v593_v61 = vpop.f32.mrb[12].mxu0 }
 0x2f5   : > { %v594_v62 = vadd.f32 %v593_v61, %v526_v59  ;;  %v595_v63 = vpop.f32.mrb[13].mxu0 }
 0x2f6   : > { %v596_v8 = vadd.f32 %v595_v63, %v526_v59  ;;  %v597_v9 = vpop.f32.mrb[14].mxu0  ;;  %660 = vmatprep.subr.bf16.mxu1 %v616_v60 }
 0x2f7   : > { %v598_v12 = vadd.f32 %v597_v9, %v531_v4  ;;  %v599_v13 = vpop.f32.mrb[15].mxu0  ;;  %661 = vmatpush1.bf16.msra.mxu1 %v615_v58  ;;  %v606_v15 = vmax.f32 %v594_v62, 0.0 }
 0x2f8   : > { %v600_v14 = vadd.f32 %v599_v13, %v531_v4  ;;  %v607_v17 = vmax.f32 %v596_v8, 0.0 }
 0x2f9   : > { %v608_v16 = vmax.f32 %v598_v12, 0.0 }
 0x2fa   : > { %v609_v18 = vmax.f32 %v600_v14, 0.0 }
 0x2fb   : > { %v617_v20 = vpack.c.bf16 %v608_v16, %v606_v15 }
 0x2fc   : > { %v618_v25 = vpack.c.bf16 %v609_v18, %v607_v17 }
 0x2fe   : > { %662 = vmatprep.subr.bf16.mxu1 %v618_v25 }
 0x2ff   : > { %663 = vmatpush1.bf16.msra.mxu1 %v617_v20 }
 0x302   : > { %880 = vmatmul.mubr.msk.bf16.vlgmr.msra.gmra.mrb[8].mxu1 %vm314_vm0, %v964_v28 }
 0x303   : > { %702 = vmatprep.mubr.bf16.mxu1 %v1083_v0 }
 0x30a   : > { %881 = vmatmul.mubr.msk.bf16.gmra.mrb[12].mxu1 %vm314_vm0, %v965_v29 }
 0x3d5   : > { %v694_v3 = vpop.f32.mrb[8].mxu1 }
 0x3d6   : > { %v695_v31 = vadd.f32 %v694_v3, %v627_v30  ;;  %v696_v32 = vpop.f32.mrb[9].mxu1 }
 0x3d7   : > { %v697_v5 = vadd.f32 %v696_v32, %v627_v30  ;;  %v698_v33 = vpop.f32.mrb[10].mxu1 }
 0x3d8   : > { %v713_v34 = vadd.f32 %v695_v31, %v491_v1  ;;  %v699_v36 = vadd.f32 %v698_v33, %v632_v2  ;;  %v700_v10 = vpop.f32.mrb[11].mxu1 }
 0x3d9   : > { %v714_v0 = vadd.f32 %v697_v5, %v492_v26  ;;  %v701_v11 = vadd.f32 %v700_v10, %v632_v2 }
 0x3da   : > { %v721_v7 = vmax.f32 %v713_v34, 0.0  ;;  %v715_v43 = vadd.f32 %v699_v36, %v493_v24 }
 0x3db   : > { %v722_v44 = vmax.f32 %v714_v0, 0.0  ;;  %v716_v45 = vadd.f32 %v701_v11, %v494_v27 }
 0x3dc   : > { %729 = vst [vmem:[%s1411_s25] sm:$0xff] %v721_v7  ;;  %v723_v19 = vmax.f32 %v715_v43, 0.0 }
 0x3dd   : > { %730 = vst [vmem:[%s1411_s25 + $0x8] sm:$0xff] %v722_v44  ;;  %v724_v26 = vmax.f32 %v716_v45, 0.0  ;;  %v704_v22 = vpop.f32.mrb[12].mxu1 }
 0x3de   : > { %731 = vst [vmem:[%s1411_s25 + $0x10] sm:$0xff] %v723_v19  ;;  %v705_v24 = vadd.f32 %v704_v22, %v637_v21  ;;  %v706_v1 = vpop.f32.mrb[13].mxu1 }
 0x3df   : > { %732 = vst [vmem:[%s1411_s25 + $0x18] sm:$0xff] %v724_v26  ;;  %v707_v27 = vadd.f32 %v706_v1, %v637_v21  ;;  %v708_v46 = vpop.f32.mrb[14].mxu1 }
 0x3e0   : > { %v717_v47 = vadd.f32 %v705_v24, %v495_v6  ;;  %v709_v48 = vadd.f32 %v708_v46, %v642_v23  ;;  %v710_v49 = vpop.f32.mrb[15].mxu1 }
 0x3e1   : > { %v718_v50 = vadd.f32 %v707_v27, %v496_v41  ;;  %v711_v51 = vadd.f32 %v710_v49, %v642_v23 }
 0x3e2   : > { %v725_v52 = vmax.f32 %v717_v47, 0.0  ;;  %v719_v53 = vadd.f32 %v709_v48, %v497_v40 }
 0x3e3   : > { %v726_v37 = vmax.f32 %v718_v50, 0.0  ;;  %v720_v6 = vadd.f32 %v711_v51, %v498_v42 }
 0x3e4   : > { %733 = vst [vmem:[%s1411_s25 + $0x20] sm:$0xff] %v725_v52  ;;  %v727_v35 = vmax.f32 %v719_v53, 0.0 }
 0x3e5   : > { %734 = vst [vmem:[%s1411_s25 + $0x28] sm:$0xff] %v726_v37  ;;  %v728_v41 = vmax.f32 %v720_v6, 0.0 }
 0x3e6   : > { %735 = vst [vmem:[%s1411_s25 + $0x30] sm:$0xff] %v727_v35 }
 0x3e7   : > { %736 = vst [vmem:[%s1411_s25 + $0x38] sm:$0xff] %v728_v41 }
 0x3e8   : > { %1009 = shalt.err (!%p1006_p5)
}
 0x3e9   : > { %s1010_s9 = scalar_lea.hbm %s1433_s21, 1024  ;;  %s1014_s15 = scalar_lea.hbm %s1490_s5, 2048 }
 0x3ea   : > { %p1011_p4 = scmp.ne.s32.totalorder %s1433_s21, %s1010_s9  ;;  %p1015_p12 = scmp.lt.u32.totalorder %s1433_s21, %s1490_s5 }
 0x3eb   : > { %p1016_p1 = scmp.lt.u32.totalorder %s1014_s15, %s1010_s9  ;;  %p1018_p8 = scmp.lt.u32.totalorder %s1010_s9, %s1433_s21 }
 0x3ec   : > { %p1012_p7 = pnand %p1011_p4, %p1498_p9 }
 0x3ed   : > { %p1017_p3 = por %p1016_p1, %p1015_p12 }
 0x3ee   : > { %p1013_p10 = pneg %p1012_p7 }
 0x3ef   : > { %p1019_p11 = por %p1018_p8, %p1017_p3 }
 0x3f1   : > { %p1020_p0 = pnand %p1019_p11, %p1013_p10 }
 0x3f3   : > { %1023 = shalt.err (!%p1020_p0)
}
 0x3f4   : > { %s1085_s10 = smov 256   ;;  %s1086_s11 = smov 16  }
 0x3f5   : > { %891 = dma.vmem_to_hbm [thread:$0]  (%p1498_p9), %s1425_s28, 1024, %s1433_s21, %s738_s30, %s1085_s10, %s1085_s10, %s1086_s11  }
 0x3f6 PF: > { %s768_s14 = sand.u32 1, %s1058_s18   ;;  %p1499_p6 = scmp.ne.s32.totalorder %s1495_s8, 0 }
 0x3f7   : > { %p1500_p13 = scmp.ge.s32.totalorder %s1078_s23, 2  ;;  %s769_s16 = scalar_lea.sflag [#allocation4], %s768_s14 }
 0x3f9   : > { %p898_p2 = pnand %p1500_p13, %p1499_p6 }
 0x3fb   : > { %1053 = dma.done.wait (!%p898_p2), %s769_s16, 1024  }
 0x3fc   : > { %1055 = vsyncadd (!%p898_p2), %s769_s16, 4294966272  ;;  %s21_s23 = sadd.s32 1, %s1078_s23   ;;  %s1501_s18 = smov %s1062_s19 }
 0x3fd   : > { %p18_p5 = scmp.ge.s32.totalorder %s21_s23, 4   ;;  %s1502_s19 = smov %s1066_s20 }
 0x3fe   : > { %s1503_s20 = smov %s1173_s7  ;;  %s1504_s21 = smov %s1074_s22 }
 0x3ff   : > { %s1505_s22 = smov %s1507_s26  ;;  %20 = sbr.rel (!%p18_p5) target bundleno = 6 (0x6), region = 89 }
 0x406   :  { %774 = vsyncpa [#allocation3], 1 }
 0x407   :  { %776 = vsyncpa [#allocation3 + $0x1], 1 }
 0x408   :  { %777 = vsyncpa [#allocation4], 1 }
 0x409   :  { %779 = vsyncpa [#allocation4 + $0x1], 1 }

</bundles_post_ra>
